<compile_context>
chip_gen: v7x
topology: tpu7x:2x2x1
jax: 0.10.0
libtpu: 0.0.40
codegen_flags: <defaults>
</compile_context>

<pallas_src>
import functools

import numpy as np

import jax
import jax.numpy as jnp
from jax.experimental import pallas as pl
from jax.experimental.pallas import tpu as pltpu

EPS = 1e-5  # nn.BatchNorm2d default


# ---------------------------------------------------------------------------
# Fused kernel: entire BasicBlock forward on VMEM-resident (C, M) data.
# ---------------------------------------------------------------------------
def _basic_block_kernel(*refs, K, pad, Ho, Wo, stride_one, eps):
    if stride_one:
        (x_ref, idx_ref, w1_ref, w2_ref,
         g1_ref, b1_ref, g2_ref, b2_ref,
         o_ref, taps1_ref, taps2_ref) = refs
    else:
        (x1_ref, xd_ref, idx_ref, w1_ref, wd_ref, w2_ref,
         g1_ref, b1_ref, gd_ref, bd_ref, g2_ref, b2_ref,
         o_ref, taps2_ref) = refs

    M = o_ref.shape[1]
    inv_m = 1.0 / M
    bf16 = jnp.bfloat16

    # Output-grid coordinates per column (tiny i32 input; at production tile
    # sizes these would be derived in-kernel from broadcasted_iota).
    hpos = idx_ref[0:1, :]                      # (1, M) int32
    wpos = idx_ref[1:2, :]                      # (1, M) int32

    def bn(acc, g_ref, b_ref):
        # Two-pass batch stats; biased variance == PyTorch training-mode fwd.
        mean = jnp.sum(acc, axis=1, keepdims=True) * inv_m
        cent = acc - mean
        var = jnp.sum(cent * cent, axis=1, keepdims=True) * inv_m
        return cent * jax.lax.rsqrt(var + eps) * g_ref[...] + b_ref[...]

    def fill_taps(src, taps_ref):
        # Stack the K*K spatially shifted copies of `src` along the sublane
        # (contraction) axis so the convolution becomes ONE deep MXU matmul.
        C = src.shape[0]
        for kh in range(K):
            for kw in range(K):
                dh, dw = kh - pad, kw - pad
                t = kh * K + kw
                if dh == 0 and dw == 0:
                    tap = src
                else:
                    d = dh * Wo + dw
                    tap = pltpu.roll(src, shift=(-d) % M, axis=1)
                    inb = ((hpos + dh >= 0) & (hpos + dh < Ho) &
                           (wpos + dw >= 0) & (wpos + dw < Wo))
                    tap = tap * inb.astype(jnp.float32)        # (1,M) bcast
                taps_ref[pl.ds(t * C, C), :] = tap

    # ---- conv1 + bn1 + relu: one deep-contraction matmul ----
    if stride_one:
        fill_taps(x_ref[...], taps1_ref)            # in-kernel "im2col"
        x1 = taps1_ref[...]
    else:
        x1 = x1_ref[...]                            # pre-built strided taps
    acc1 = jnp.dot(w1_ref[...], x1.astype(bf16),
                   preferred_element_type=jnp.float32)
    out1 = jnp.maximum(bn(acc1, g1_ref, b1_ref), 0.0)

    # ---- residual: fused 1x1 downsample conv + BN, or the identity input ----
    if stride_one:
        residual = x_ref[...]
    else:
        accd = jnp.dot(wd_ref[...], xd_ref[...],
                       preferred_element_type=jnp.float32)
        residual = bn(accd, gd_ref, bd_ref)

    # ---- conv2 + bn2: K*K shifted taps of out1 stacked -> one deep matmul ----
    fill_taps(out1, taps2_ref)
    acc2 = jnp.dot(w2_ref[...], taps2_ref[...].astype(bf16),
                   preferred_element_type=jnp.float32)

    out = jnp.maximum(bn(acc2, g2_ref, b2_ref) + residual, 0.0)
    o_ref[...] = out.astype(o_ref.dtype)


# ---------------------------------------------------------------------------
# Wrapper-side helpers (only the strided conv1 taps are built outside).
# ---------------------------------------------------------------------------
def _im2col_t(x_nchw, K, stride, padding):
    """Transposed patch matrix for strided conv1: (K*K*Cin, N*Ho*Wo)."""
    N, C, H, W = x_nchw.shape
    xp = jnp.pad(x_nchw, ((0, 0), (0, 0), (padding, padding), (padding, padding)))
    Ho = (H + 2 * padding - K) // stride + 1
    Wo = (W + 2 * padding - K) // stride + 1
    cols = []
    for kh in range(K):
        for kw in range(K):
            cols.append(xp[:, :, kh:kh + stride * Ho:stride, kw:kw + stride * Wo:stride])
    p = jnp.stack(cols, axis=0)                  # (K*K, N, C, Ho, Wo)
    p = jnp.transpose(p, (0, 2, 1, 3, 4))        # (K*K, C, N, Ho, Wo)
    return p.reshape(K * K * C, N * Ho * Wo)


# ---------------------------------------------------------------------------
# BasicBlock forward (NCHW in / NCHW out)
# ---------------------------------------------------------------------------
def basic_block_forward(x_nchw, params, *, kernel_size, stride, padding):
    K = kernel_size
    assert 2 * padding == K - 1, "residual add requires 'same' convs (2*padding == K-1)"
    N, Cin, H, W = x_nchw.shape
    Cout = params["w1"].shape[0]
    Ho = (H + 2 * padding - K) // stride + 1
    Wo = (W + 2 * padding - K) // stride + 1
    M = N * Ho * Wo
    x = x_nchw.astype(jnp.float32)
    bf = jnp.bfloat16

    # (ho, wo) per output column, for in-kernel boundary masks.
    m = np.arange(M)
    idx = jnp.asarray(np.stack([(m // Wo) % Ho, m % Wo]).astype(np.int32))  # (2, M)

    # Weights: deep-contraction layouts, bf16 MXU operands.
    w1m = jnp.transpose(params["w1"], (0, 2, 3, 1)).reshape(Cout, K * K * Cin).astype(bf)
    w2m = jnp.transpose(params["w2"], (0, 2, 3, 1)).reshape(Cout, K * K * Cout).astype(bf)
    col = lambda v: v.reshape(-1, 1).astype(jnp.float32)

    stride_one = (stride == 1)
    if stride_one:
        assert Cin == Cout, "identity residual requires in_planes == out_planes"
        # Raw (Cin, M) input: conv1 tap source AND identity residual (f32).
        xcm = jnp.transpose(x, (1, 0, 2, 3)).reshape(Cin, M)
        args = (xcm, idx, w1m, w2m,
                col(params["g1"]), col(params["b1"]),
                col(params["g2"]), col(params["b2"]))
        scratch = [pltpu.VMEM((K * K * Cin, M), jnp.float32),
                   pltpu.VMEM((K * K * Cout, M), jnp.float32)]
    else:
        # TODO(synk): build strided conv1 taps in-kernel at production sizes.
        x1t = _im2col_t(x, K, stride, padding).astype(bf)          # (K*K*Cin, M)
        xdt = jnp.transpose(x[:, :, ::stride, ::stride],
                            (1, 0, 2, 3)).reshape(Cin, M).astype(bf)
        wdm = params["wd"].reshape(Cout, Cin).astype(bf)
        args = (x1t, xdt, idx, w1m, wdm, w2m,
                col(params["g1"]), col(params["b1"]),
                col(params["gd"]), col(params["bd"]),
                col(params["g2"]), col(params["b2"]))
        scratch = [pltpu.VMEM((K * K * Cout, M), jnp.float32)]

    kernel = functools.partial(_basic_block_kernel, K=K, pad=padding,
                               Ho=Ho, Wo=Wo, stride_one=stride_one, eps=EPS)

    flops = 2 * M * Cout * (K * K * Cin + K * K * Cout
                            + (0 if stride_one else Cin))
    bytes_accessed = (sum(int(np.prod(a.shape)) * a.dtype.itemsize for a in args)
                      + M * Cout * 4)

    out_cm = pl.pallas_call(                 # whole block VMEM-resident, grid ()
        kernel,
        out_shape=jax.ShapeDtypeStruct((Cout, M), jnp.float32),
        in_specs=[pl.BlockSpec(memory_space=pltpu.MemorySpace.VMEM)] * len(args),
        out_specs=pl.BlockSpec(memory_space=pltpu.MemorySpace.VMEM),
        scratch_shapes=scratch,
        compiler_params=pltpu.CompilerParams(vmem_limit_bytes=32 * 1024 * 1024),
        cost_estimate=pl.CostEstimate(flops=flops, transcendentals=4 * Cout,
                                      bytes_accessed=bytes_accessed),
    )(*args)

    # NCHW module contract at the boundary; a full LinkNet would stay in the
    # lane-dense (C, M) layout between blocks and skip this conversion.
    return jnp.transpose(out_cm.reshape(Cout, N, Ho, Wo), (1, 0, 2, 3))


# ---------------------------------------------------------------------------
# Pure-JAX reference (mirrors the PyTorch module in training mode, f32)
# ---------------------------------------------------------------------------
def reference_forward(x, params, *, kernel_size, stride, padding):
    def conv(x, w, s, p):
        return jax.lax.conv_general_dilated(
            x, w, (s, s), [(p, p), (p, p)],
            dimension_numbers=("NCHW", "OIHW", "NCHW"))

    def bn(x, g, b):
        mean = x.mean(axis=(0, 2, 3), keepdims=True)
        var = ((x - mean) ** 2).mean(axis=(0, 2, 3), keepdims=True)
        xn = (x - mean) * jax.lax.rsqrt(var + EPS)
        return xn * g.reshape(1, -1, 1, 1) + b.reshape(1, -1, 1, 1)

    out = jnp.maximum(bn(conv(x, params["w1"], stride, padding),
                         params["g1"], params["b1"]), 0.0)
    out = bn(conv(out, params["w2"], 1, padding), params["g2"], params["b2"])
    residual = x
    if stride > 1:
        residual = bn(conv(x, params["wd"], stride, 0), params["gd"], params["bd"])
    return jnp.maximum(out + residual, 0.0)


def _make_params(key, cin, cout, K, with_downsample):
    ks = jax.random.split(key, 9)
    p = {
        "w1": jax.random.normal(ks[0], (cout, cin, K, K), jnp.float32) * 0.1,
        "g1": 1.0 + 0.1 * jax.random.normal(ks[1], (cout,), jnp.float32),
        "b1": 0.1 * jax.random.normal(ks[2], (cout,), jnp.float32),
        "w2": jax.random.normal(ks[3], (cout, cout, K, K), jnp.float32) * 0.1,
        "g2": 1.0 + 0.1 * jax.random.normal(ks[4], (cout,), jnp.float32),
        "b2": 0.1 * jax.random.normal(ks[5], (cout,), jnp.float32),
    }
    if with_downsample:
        p["wd"] = jax.random.normal(ks[6], (cout, cin, 1, 1), jnp.float32) * 0.1
        p["gd"] = 1.0 + 0.1 * jax.random.normal(ks[7], (cout,), jnp.float32)
        p["bd"] = 0.1 * jax.random.normal(ks[8], (cout,), jnp.float32)
    return p


if __name__ == "__main__":
    key = jax.random.PRNGKey(0)
    k0, k1, k2, k3 = jax.random.split(key, 4)

    # bf16 MXU operands (f32 accumulation / BN) => looser tolerance vs the
    # all-f32 reference, as anticipated by the review.
    ATOL = RTOL = 5e-2

    # Case 1: BasicBlock(4, 8, kernel_size=3, stride=2, padding=1), x = (2,4,16,16)
    in_planes, out_planes, K, stride, padding = 4, 8, 3, 2, 1
    N, H, W = 2, 16, 16
    x = jax.random.normal(k0, (N, in_planes, H, W), jnp.float32)
    params = _make_params(k1, in_planes, out_planes, K, with_downsample=True)

    fwd = jax.jit(functools.partial(basic_block_forward,
                                    kernel_size=K, stride=stride, padding=padding))
    out = jax.block_until_ready(fwd(x, params))
    ref = reference_forward(x, params, kernel_size=K, stride=stride, padding=padding)
    assert out.shape == ref.shape == (N, out_planes, H // stride, W // stride), out.shape
    assert jnp.allclose(out, ref, atol=ATOL, rtol=RTOL), float(jnp.abs(out - ref).max())

    # Case 2: identity residual: BasicBlock(8, 8, 3, stride=1, padding=1), x = (2,8,8,8)
    cin2 = cout2 = 8
    N2, H2, W2 = 2, 8, 8
    x2 = jax.random.normal(k2, (N2, cin2, H2, W2), jnp.float32)
    params2 = _make_params(k3, cin2, cout2, K, with_downsample=False)

    fwd2 = jax.jit(functools.partial(basic_block_forward,
                                     kernel_size=K, stride=1, padding=1))
    out2 = jax.block_until_ready(fwd2(x2, params2))
    ref2 = reference_forward(x2, params2, kernel_size=K, stride=1, padding=1)
    assert out2.shape == ref2.shape == (N2, cout2, H2, W2), out2.shape
    assert jnp.allclose(out2, ref2, atol=ATOL, rtol=RTOL), float(jnp.abs(out2 - ref2).max())

    print("KERNEL_OK")
</pallas_src>

<mosaic_0001>
module attributes {stable_mosaic.version = 11 : i64} {
  func.func @_basic_block_kernel(%arg0: memref<36x128xbf16, #tpu.memory_space<vmem>>, %arg1: memref<4x128xbf16, #tpu.memory_space<vmem>>, %arg2: memref<2x128xi32, #tpu.memory_space<vmem>>, %arg3: memref<8x36xbf16, #tpu.memory_space<vmem>>, %arg4: memref<8x4xbf16, #tpu.memory_space<vmem>>, %arg5: memref<8x72xbf16, #tpu.memory_space<vmem>>, %arg6: memref<8x1xf32, #tpu.memory_space<vmem>>, %arg7: memref<8x1xf32, #tpu.memory_space<vmem>>, %arg8: memref<8x1xf32, #tpu.memory_space<vmem>>, %arg9: memref<8x1xf32, #tpu.memory_space<vmem>>, %arg10: memref<8x1xf32, #tpu.memory_space<vmem>>, %arg11: memref<8x1xf32, #tpu.memory_space<vmem>>, %arg12: memref<8x128xf32, #tpu.memory_space<vmem>>, %arg13: memref<72x128xf32, #tpu.memory_space<vmem>>) attributes {dimension_semantics = [], scalar_prefetch = 0 : i64, scratch_operands = 1 : i64, tpu.core_type = #tpu.core_type<tc>} {
    %c0 = arith.constant 0 : index
    %c0_0 = arith.constant 0 : index
    %0 = vector.load %arg2[%c0, %c0_0] : memref<2x128xi32, #tpu.memory_space<vmem>>, vector<1x128xi32>
    %c1 = arith.constant 1 : index
    %c0_1 = arith.constant 0 : index
    %1 = vector.load %arg2[%c1, %c0_1] : memref<2x128xi32, #tpu.memory_space<vmem>>, vector<1x128xi32>
    %c0_2 = arith.constant 0 : index
    %c0_3 = arith.constant 0 : index
    %2 = vector.load %arg0[%c0_2, %c0_3] : memref<36x128xbf16, #tpu.memory_space<vmem>>, vector<36x128xbf16>
    %c0_4 = arith.constant 0 : index
    %c0_5 = arith.constant 0 : index
    %3 = vector.load %arg3[%c0_4, %c0_5] : memref<8x36xbf16, #tpu.memory_space<vmem>>, vector<8x36xbf16>
    %cst = arith.constant dense<0.000000e+00> : vector<8x128xf32>
    %4 = tpu.matmul %3, %2, %cst {dimension_numbers = #tpu.dot_dimension_numbers<[1], [0], [0], [1], [0, 0, 1, 1], [], []>} : vector<8x36xbf16>, vector<36x128xbf16>, vector<8x128xf32> -> vector<8x128xf32>
    %cst_6 = arith.constant dense<0.000000e+00> : vector<8xf32>
    %5 = vector.multi_reduction <add>, %4, %cst_6 [1] : vector<8x128xf32> to vector<8xf32>
    %6 = vector.shape_cast %5 : vector<8xf32> to vector<8x1xf32>
    %cst_7 = arith.constant 7.812500e-03 : f32
    %7 = vector.broadcast %cst_7 : f32 to vector<8x1xf32>
    %8 = arith.mulf %6, %7 : vector<8x1xf32>
    %9 = vector.broadcast %8 : vector<8x1xf32> to vector<8x128xf32>
    %10 = arith.subf %4, %9 : vector<8x128xf32>
    %11 = arith.mulf %10, %10 : vector<8x128xf32>
    %cst_8 = arith.constant dense<0.000000e+00> : vector<8xf32>
    %12 = vector.multi_reduction <add>, %11, %cst_8 [1] : vector<8x128xf32> to vector<8xf32>
    %13 = vector.shape_cast %12 : vector<8xf32> to vector<8x1xf32>
    %cst_9 = arith.constant 7.812500e-03 : f32
    %14 = vector.broadcast %cst_9 : f32 to vector<8x1xf32>
    %15 = arith.mulf %13, %14 : vector<8x1xf32>
    %cst_10 = arith.constant 9.99999974E-6 : f32
    %16 = vector.broadcast %cst_10 : f32 to vector<8x1xf32>
    %17 = arith.addf %15, %16 : vector<8x1xf32>
    %18 = math.rsqrt %17 : vector<8x1xf32>
    %19 = vector.broadcast %18 : vector<8x1xf32> to vector<8x128xf32>
    %20 = arith.mulf %10, %19 : vector<8x128xf32>
    %c0_11 = arith.constant 0 : index
    %c0_12 = arith.constant 0 : index
    %21 = vector.load %arg6[%c0_11, %c0_12] : memref<8x1xf32, #tpu.memory_space<vmem>>, vector<8x1xf32>
    %22 = vector.broadcast %21 : vector<8x1xf32> to vector<8x128xf32>
    %23 = arith.mulf %20, %22 : vector<8x128xf32>
    %c0_13 = arith.constant 0 : index
    %c0_14 = arith.constant 0 : index
    %24 = vector.load %arg7[%c0_13, %c0_14] : memref<8x1xf32, #tpu.memory_space<vmem>>, vector<8x1xf32>
    %25 = vector.broadcast %24 : vector<8x1xf32> to vector<8x128xf32>
    %26 = arith.addf %23, %25 : vector<8x128xf32>
    %cst_15 = arith.constant 0.000000e+00 : f32
    %27 = vector.broadcast %cst_15 : f32 to vector<8x128xf32>
    %28 = arith.maximumf %26, %27 : vector<8x128xf32>
    %c0_16 = arith.constant 0 : index
    %c0_17 = arith.constant 0 : index
    %29 = vector.load %arg4[%c0_16, %c0_17] : memref<8x4xbf16, #tpu.memory_space<vmem>>, vector<8x4xbf16>
    %c0_18 = arith.constant 0 : index
    %c0_19 = arith.constant 0 : index
    %30 = vector.load %arg1[%c0_18, %c0_19] : memref<4x128xbf16, #tpu.memory_space<vmem>>, vector<4x128xbf16>
    %cst_20 = arith.constant dense<0.000000e+00> : vector<8x128xf32>
    %31 = tpu.matmul %29, %30, %cst_20 {dimension_numbers = #tpu.dot_dimension_numbers<[1], [0], [0], [1], [0, 0, 1, 1], [], []>} : vector<8x4xbf16>, vector<4x128xbf16>, vector<8x128xf32> -> vector<8x128xf32>
    %cst_21 = arith.constant dense<0.000000e+00> : vector<8xf32>
    %32 = vector.multi_reduction <add>, %31, %cst_21 [1] : vector<8x128xf32> to vector<8xf32>
    %33 = vector.shape_cast %32 : vector<8xf32> to vector<8x1xf32>
    %cst_22 = arith.constant 7.812500e-03 : f32
    %34 = vector.broadcast %cst_22 : f32 to vector<8x1xf32>
    %35 = arith.mulf %33, %34 : vector<8x1xf32>
    %36 = vector.broadcast %35 : vector<8x1xf32> to vector<8x128xf32>
    %37 = arith.subf %31, %36 : vector<8x128xf32>
    %38 = arith.mulf %37, %37 : vector<8x128xf32>
    %cst_23 = arith.constant dense<0.000000e+00> : vector<8xf32>
    %39 = vector.multi_reduction <add>, %38, %cst_23 [1] : vector<8x128xf32> to vector<8xf32>
    %40 = vector.shape_cast %39 : vector<8xf32> to vector<8x1xf32>
    %cst_24 = arith.constant 7.812500e-03 : f32
    %41 = vector.broadcast %cst_24 : f32 to vector<8x1xf32>
    %42 = arith.mulf %40, %41 : vector<8x1xf32>
    %cst_25 = arith.constant 9.99999974E-6 : f32
    %43 = vector.broadcast %cst_25 : f32 to vector<8x1xf32>
    %44 = arith.addf %42, %43 : vector<8x1xf32>
    %45 = math.rsqrt %44 : vector<8x1xf32>
    %46 = vector.broadcast %45 : vector<8x1xf32> to vector<8x128xf32>
    %47 = arith.mulf %37, %46 : vector<8x128xf32>
    %c0_26 = arith.constant 0 : index
    %c0_27 = arith.constant 0 : index
    %48 = vector.load %arg8[%c0_26, %c0_27] : memref<8x1xf32, #tpu.memory_space<vmem>>, vector<8x1xf32>
    %49 = vector.broadcast %48 : vector<8x1xf32> to vector<8x128xf32>
    %50 = arith.mulf %47, %49 : vector<8x128xf32>
    %c0_28 = arith.constant 0 : index
    %c0_29 = arith.constant 0 : index
    %51 = vector.load %arg9[%c0_28, %c0_29] : memref<8x1xf32, #tpu.memory_space<vmem>>, vector<8x1xf32>
    %52 = vector.broadcast %51 : vector<8x1xf32> to vector<8x128xf32>
    %53 = arith.addf %50, %52 : vector<8x128xf32>
    %c9_i32 = arith.constant 9 : i32
    %54 = tpu.dynamic_rotate %28 by %c9_i32 dim 1 : vector<8x128xf32>, i32 -> vector<8x128xf32>
    %c-1_i32 = arith.constant -1 : i32
    %55 = vector.broadcast %c-1_i32 : i32 to vector<1x128xi32>
    %56 = arith.addi %0, %55 : vector<1x128xi32>
    %c0_i32 = arith.constant 0 : i32
    %57 = vector.broadcast %c0_i32 : i32 to vector<1x128xi32>
    %58 = arith.cmpi sge, %56, %57 : vector<1x128xi32>
    %c-1_i32_30 = arith.constant -1 : i32
    %59 = vector.broadcast %c-1_i32_30 : i32 to vector<1x128xi32>
    %60 = arith.addi %0, %59 : vector<1x128xi32>
    %c8_i32 = arith.constant 8 : i32
    %61 = vector.broadcast %c8_i32 : i32 to vector<1x128xi32>
    %62 = arith.cmpi slt, %60, %61 : vector<1x128xi32>
    %63 = arith.andi %58, %62 : vector<1x128xi1>
    %c-1_i32_31 = arith.constant -1 : i32
    %64 = vector.broadcast %c-1_i32_31 : i32 to vector<1x128xi32>
    %65 = arith.addi %1, %64 : vector<1x128xi32>
    %c0_i32_32 = arith.constant 0 : i32
    %66 = vector.broadcast %c0_i32_32 : i32 to vector<1x128xi32>
    %67 = arith.cmpi sge, %65, %66 : vector<1x128xi32>
    %68 = arith.andi %63, %67 : vector<1x128xi1>
    %c-1_i32_33 = arith.constant -1 : i32
    %69 = vector.broadcast %c-1_i32_33 : i32 to vector<1x128xi32>
    %70 = arith.addi %1, %69 : vector<1x128xi32>
    %c8_i32_34 = arith.constant 8 : i32
    %71 = vector.broadcast %c8_i32_34 : i32 to vector<1x128xi32>
    %72 = arith.cmpi slt, %70, %71 : vector<1x128xi32>
    %73 = arith.andi %68, %72 : vector<1x128xi1>
    %74 = arith.extui %73 : vector<1x128xi1> to vector<1x128xi32>
    %75 = arith.sitofp %74 : vector<1x128xi32> to vector<1x128xf32>
    %76 = vector.broadcast %75 : vector<1x128xf32> to vector<8x128xf32>
    %77 = arith.mulf %54, %76 : vector<8x128xf32>
    %c0_35 = arith.constant 0 : index
    %c0_36 = arith.constant 0 : index
    %78 = vector.load %arg13[%c0_35, %c0_36] : memref<72x128xf32, #tpu.memory_space<vmem>>, vector<8x128xf32>
    tpu.vector_store %arg13[%c0_35, %c0_36], %77 {strides = array<i32>} : memref<72x128xf32, #tpu.memory_space<vmem>>, vector<8x128xf32>,
    %c8_i32_37 = arith.constant 8 : i32
    %79 = tpu.dynamic_rotate %28 by %c8_i32_37 dim 1 : vector<8x128xf32>, i32 -> vector<8x128xf32>
    %c-1_i32_38 = arith.constant -1 : i32
    %80 = vector.broadcast %c-1_i32_38 : i32 to vector<1x128xi32>
    %81 = arith.addi %0, %80 : vector<1x128xi32>
    %c0_i32_39 = arith.constant 0 : i32
    %82 = vector.broadcast %c0_i32_39 : i32 to vector<1x128xi32>
    %83 = arith.cmpi sge, %81, %82 : vector<1x128xi32>
    %c-1_i32_40 = arith.constant -1 : i32
    %84 = vector.broadcast %c-1_i32_40 : i32 to vector<1x128xi32>
    %85 = arith.addi %0, %84 : vector<1x128xi32>
    %c8_i32_41 = arith.constant 8 : i32
    %86 = vector.broadcast %c8_i32_41 : i32 to vector<1x128xi32>
    %87 = arith.cmpi slt, %85, %86 : vector<1x128xi32>
    %88 = arith.andi %83, %87 : vector<1x128xi1>
    %c0_i32_42 = arith.constant 0 : i32
    %89 = vector.broadcast %c0_i32_42 : i32 to vector<1x128xi32>
    %90 = arith.addi %1, %89 : vector<1x128xi32>
    %c0_i32_43 = arith.constant 0 : i32
    %91 = vector.broadcast %c0_i32_43 : i32 to vector<1x128xi32>
    %92 = arith.cmpi sge, %90, %91 : vector<1x128xi32>
    %93 = arith.andi %88, %92 : vector<1x128xi1>
    %c0_i32_44 = arith.constant 0 : i32
    %94 = vector.broadcast %c0_i32_44 : i32 to vector<1x128xi32>
    %95 = arith.addi %1, %94 : vector<1x128xi32>
    %c8_i32_45 = arith.constant 8 : i32
    %96 = vector.broadcast %c8_i32_45 : i32 to vector<1x128xi32>
    %97 = arith.cmpi slt, %95, %96 : vector<1x128xi32>
    %98 = arith.andi %93, %97 : vector<1x128xi1>
    %99 = arith.extui %98 : vector<1x128xi1> to vector<1x128xi32>
    %100 = arith.sitofp %99 : vector<1x128xi32> to vector<1x128xf32>
    %101 = vector.broadcast %100 : vector<1x128xf32> to vector<8x128xf32>
    %102 = arith.mulf %79, %101 : vector<8x128xf32>
    %c8 = arith.constant 8 : index
    %c0_46 = arith.constant 0 : index
    %103 = vector.load %arg13[%c8, %c0_46] : memref<72x128xf32, #tpu.memory_space<vmem>>, vector<8x128xf32>
    tpu.vector_store %arg13[%c8, %c0_46], %102 {strides = array<i32>} : memref<72x128xf32, #tpu.memory_space<vmem>>, vector<8x128xf32>,
    %c7_i32 = arith.constant 7 : i32
    %104 = tpu.dynamic_rotate %28 by %c7_i32 dim 1 : vector<8x128xf32>, i32 -> vector<8x128xf32>
    %c-1_i32_47 = arith.constant -1 : i32
    %105 = vector.broadcast %c-1_i32_47 : i32 to vector<1x128xi32>
    %106 = arith.addi %0, %105 : vector<1x128xi32>
    %c0_i32_48 = arith.constant 0 : i32
    %107 = vector.broadcast %c0_i32_48 : i32 to vector<1x128xi32>
    %108 = arith.cmpi sge, %106, %107 : vector<1x128xi32>
    %c-1_i32_49 = arith.constant -1 : i32
    %109 = vector.broadcast %c-1_i32_49 : i32 to vector<1x128xi32>
    %110 = arith.addi %0, %109 : vector<1x128xi32>
    %c8_i32_50 = arith.constant 8 : i32
    %111 = vector.broadcast %c8_i32_50 : i32 to vector<1x128xi32>
    %112 = arith.cmpi slt, %110, %111 : vector<1x128xi32>
    %113 = arith.andi %108, %112 : vector<1x128xi1>
    %c1_i32 = arith.constant 1 : i32
    %114 = vector.broadcast %c1_i32 : i32 to vector<1x128xi32>
    %115 = arith.addi %1, %114 : vector<1x128xi32>
    %c0_i32_51 = arith.constant 0 : i32
    %116 = vector.broadcast %c0_i32_51 : i32 to vector<1x128xi32>
    %117 = arith.cmpi sge, %115, %116 : vector<1x128xi32>
    %118 = arith.andi %113, %117 : vector<1x128xi1>
    %c1_i32_52 = arith.constant 1 : i32
    %119 = vector.broadcast %c1_i32_52 : i32 to vector<1x128xi32>
    %120 = arith.addi %1, %119 : vector<1x128xi32>
    %c8_i32_53 = arith.constant 8 : i32
    %121 = vector.broadcast %c8_i32_53 : i32 to vector<1x128xi32>
    %122 = arith.cmpi slt, %120, %121 : vector<1x128xi32>
    %123 = arith.andi %118, %122 : vector<1x128xi1>
    %124 = arith.extui %123 : vector<1x128xi1> to vector<1x128xi32>
    %125 = arith.sitofp %124 : vector<1x128xi32> to vector<1x128xf32>
    %126 = vector.broadcast %125 : vector<1x128xf32> to vector<8x128xf32>
    %127 = arith.mulf %104, %126 : vector<8x128xf32>
    %c16 = arith.constant 16 : index
    %c0_54 = arith.constant 0 : index
    %128 = vector.load %arg13[%c16, %c0_54] : memref<72x128xf32, #tpu.memory_space<vmem>>, vector<8x128xf32>
    tpu.vector_store %arg13[%c16, %c0_54], %127 {strides = array<i32>} : memref<72x128xf32, #tpu.memory_space<vmem>>, vector<8x128xf32>,
    %c1_i32_55 = arith.constant 1 : i32
    %129 = tpu.dynamic_rotate %28 by %c1_i32_55 dim 1 : vector<8x128xf32>, i32 -> vector<8x128xf32>
    %c0_i32_56 = arith.constant 0 : i32
    %130 = vector.broadcast %c0_i32_56 : i32 to vector<1x128xi32>
    %131 = arith.addi %0, %130 : vector<1x128xi32>
    %c0_i32_57 = arith.constant 0 : i32
    %132 = vector.broadcast %c0_i32_57 : i32 to vector<1x128xi32>
    %133 = arith.cmpi sge, %131, %132 : vector<1x128xi32>
    %c0_i32_58 = arith.constant 0 : i32
    %134 = vector.broadcast %c0_i32_58 : i32 to vector<1x128xi32>
    %135 = arith.addi %0, %134 : vector<1x128xi32>
    %c8_i32_59 = arith.constant 8 : i32
    %136 = vector.broadcast %c8_i32_59 : i32 to vector<1x128xi32>
    %137 = arith.cmpi slt, %135, %136 : vector<1x128xi32>
    %138 = arith.andi %133, %137 : vector<1x128xi1>
    %c-1_i32_60 = arith.constant -1 : i32
    %139 = vector.broadcast %c-1_i32_60 : i32 to vector<1x128xi32>
    %140 = arith.addi %1, %139 : vector<1x128xi32>
    %c0_i32_61 = arith.constant 0 : i32
    %141 = vector.broadcast %c0_i32_61 : i32 to vector<1x128xi32>
    %142 = arith.cmpi sge, %140, %141 : vector<1x128xi32>
    %143 = arith.andi %138, %142 : vector<1x128xi1>
    %c-1_i32_62 = arith.constant -1 : i32
    %144 = vector.broadcast %c-1_i32_62 : i32 to vector<1x128xi32>
    %145 = arith.addi %1, %144 : vector<1x128xi32>
    %c8_i32_63 = arith.constant 8 : i32
    %146 = vector.broadcast %c8_i32_63 : i32 to vector<1x128xi32>
    %147 = arith.cmpi slt, %145, %146 : vector<1x128xi32>
    %148 = arith.andi %143, %147 : vector<1x128xi1>
    %149 = arith.extui %148 : vector<1x128xi1> to vector<1x128xi32>
    %150 = arith.sitofp %149 : vector<1x128xi32> to vector<1x128xf32>
    %151 = vector.broadcast %150 : vector<1x128xf32> to vector<8x128xf32>
    %152 = arith.mulf %129, %151 : vector<8x128xf32>
    %c24 = arith.constant 24 : index
    %c0_64 = arith.constant 0 : index
    %153 = vector.load %arg13[%c24, %c0_64] : memref<72x128xf32, #tpu.memory_space<vmem>>, vector<8x128xf32>
    tpu.vector_store %arg13[%c24, %c0_64], %152 {strides = array<i32>} : memref<72x128xf32, #tpu.memory_space<vmem>>, vector<8x128xf32>,
    %c32 = arith.constant 32 : index
    %c0_65 = arith.constant 0 : index
    %154 = vector.load %arg13[%c32, %c0_65] : memref<72x128xf32, #tpu.memory_space<vmem>>, vector<8x128xf32>
    tpu.vector_store %arg13[%c32, %c0_65], %28 {strides = array<i32>} : memref<72x128xf32, #tpu.memory_space<vmem>>, vector<8x128xf32>,
    %c127_i32 = arith.constant 127 : i32
    %155 = tpu.dynamic_rotate %28 by %c127_i32 dim 1 : vector<8x128xf32>, i32 -> vector<8x128xf32>
    %c0_i32_66 = arith.constant 0 : i32
    %156 = vector.broadcast %c0_i32_66 : i32 to vector<1x128xi32>
    %157 = arith.addi %0, %156 : vector<1x128xi32>
    %c0_i32_67 = arith.constant 0 : i32
    %158 = vector.broadcast %c0_i32_67 : i32 to vector<1x128xi32>
    %159 = arith.cmpi sge, %157, %158 : vector<1x128xi32>
    %c0_i32_68 = arith.constant 0 : i32
    %160 = vector.broadcast %c0_i32_68 : i32 to vector<1x128xi32>
    %161 = arith.addi %0, %160 : vector<1x128xi32>
    %c8_i32_69 = arith.constant 8 : i32
    %162 = vector.broadcast %c8_i32_69 : i32 to vector<1x128xi32>
    %163 = arith.cmpi slt, %161, %162 : vector<1x128xi32>
    %164 = arith.andi %159, %163 : vector<1x128xi1>
    %c1_i32_70 = arith.constant 1 : i32
    %165 = vector.broadcast %c1_i32_70 : i32 to vector<1x128xi32>
    %166 = arith.addi %1, %165 : vector<1x128xi32>
    %c0_i32_71 = arith.constant 0 : i32
    %167 = vector.broadcast %c0_i32_71 : i32 to vector<1x128xi32>
    %168 = arith.cmpi sge, %166, %167 : vector<1x128xi32>
    %169 = arith.andi %164, %168 : vector<1x128xi1>
    %c1_i32_72 = arith.constant 1 : i32
    %170 = vector.broadcast %c1_i32_72 : i32 to vector<1x128xi32>
    %171 = arith.addi %1, %170 : vector<1x128xi32>
    %c8_i32_73 = arith.constant 8 : i32
    %172 = vector.broadcast %c8_i32_73 : i32 to vector<1x128xi32>
    %173 = arith.cmpi slt, %171, %172 : vector<1x128xi32>
    %174 = arith.andi %169, %173 : vector<1x128xi1>
    %175 = arith.extui %174 : vector<1x128xi1> to vector<1x128xi32>
    %176 = arith.sitofp %175 : vector<1x128xi32> to vector<1x128xf32>
    %177 = vector.broadcast %176 : vector<1x128xf32> to vector<8x128xf32>
    %178 = arith.mulf %155, %177 : vector<8x128xf32>
    %c40 = arith.constant 40 : index
    %c0_74 = arith.constant 0 : index
    %179 = vector.load %arg13[%c40, %c0_74] : memref<72x128xf32, #tpu.memory_space<vmem>>, vector<8x128xf32>
    tpu.vector_store %arg13[%c40, %c0_74], %178 {strides = array<i32>} : memref<72x128xf32, #tpu.memory_space<vmem>>, vector<8x128xf32>,
    %c121_i32 = arith.constant 121 : i32
    %180 = tpu.dynamic_rotate %28 by %c121_i32 dim 1 : vector<8x128xf32>, i32 -> vector<8x128xf32>
    %c1_i32_75 = arith.constant 1 : i32
    %181 = vector.broadcast %c1_i32_75 : i32 to vector<1x128xi32>
    %182 = arith.addi %0, %181 : vector<1x128xi32>
    %c0_i32_76 = arith.constant 0 : i32
    %183 = vector.broadcast %c0_i32_76 : i32 to vector<1x128xi32>
    %184 = arith.cmpi sge, %182, %183 : vector<1x128xi32>
    %c1_i32_77 = arith.constant 1 : i32
    %185 = vector.broadcast %c1_i32_77 : i32 to vector<1x128xi32>
    %186 = arith.addi %0, %185 : vector<1x128xi32>
    %c8_i32_78 = arith.constant 8 : i32
    %187 = vector.broadcast %c8_i32_78 : i32 to vector<1x128xi32>
    %188 = arith.cmpi slt, %186, %187 : vector<1x128xi32>
    %189 = arith.andi %184, %188 : vector<1x128xi1>
    %c-1_i32_79 = arith.constant -1 : i32
    %190 = vector.broadcast %c-1_i32_79 : i32 to vector<1x128xi32>
    %191 = arith.addi %1, %190 : vector<1x128xi32>
    %c0_i32_80 = arith.constant 0 : i32
    %192 = vector.broadcast %c0_i32_80 : i32 to vector<1x128xi32>
    %193 = arith.cmpi sge, %191, %192 : vector<1x128xi32>
    %194 = arith.andi %189, %193 : vector<1x128xi1>
    %c-1_i32_81 = arith.constant -1 : i32
    %195 = vector.broadcast %c-1_i32_81 : i32 to vector<1x128xi32>
    %196 = arith.addi %1, %195 : vector<1x128xi32>
    %c8_i32_82 = arith.constant 8 : i32
    %197 = vector.broadcast %c8_i32_82 : i32 to vector<1x128xi32>
    %198 = arith.cmpi slt, %196, %197 : vector<1x128xi32>
    %199 = arith.andi %194, %198 : vector<1x128xi1>
    %200 = arith.extui %199 : vector<1x128xi1> to vector<1x128xi32>
    %201 = arith.sitofp %200 : vector<1x128xi32> to vector<1x128xf32>
    %202 = vector.broadcast %201 : vector<1x128xf32> to vector<8x128xf32>
    %203 = arith.mulf %180, %202 : vector<8x128xf32>
    %c48 = arith.constant 48 : index
    %c0_83 = arith.constant 0 : index
    %204 = vector.load %arg13[%c48, %c0_83] : memref<72x128xf32, #tpu.memory_space<vmem>>, vector<8x128xf32>
    tpu.vector_store %arg13[%c48, %c0_83], %203 {strides = array<i32>} : memref<72x128xf32, #tpu.memory_space<vmem>>, vector<8x128xf32>,
    %c120_i32 = arith.constant 120 : i32
    %205 = tpu.dynamic_rotate %28 by %c120_i32 dim 1 : vector<8x128xf32>, i32 -> vector<8x128xf32>
    %c1_i32_84 = arith.constant 1 : i32
    %206 = vector.broadcast %c1_i32_84 : i32 to vector<1x128xi32>
    %207 = arith.addi %0, %206 : vector<1x128xi32>
    %c0_i32_85 = arith.constant 0 : i32
    %208 = vector.broadcast %c0_i32_85 : i32 to vector<1x128xi32>
    %209 = arith.cmpi sge, %207, %208 : vector<1x128xi32>
    %c1_i32_86 = arith.constant 1 : i32
    %210 = vector.broadcast %c1_i32_86 : i32 to vector<1x128xi32>
    %211 = arith.addi %0, %210 : vector<1x128xi32>
    %c8_i32_87 = arith.constant 8 : i32
    %212 = vector.broadcast %c8_i32_87 : i32 to vector<1x128xi32>
    %213 = arith.cmpi slt, %211, %212 : vector<1x128xi32>
    %214 = arith.andi %209, %213 : vector<1x128xi1>
    %c0_i32_88 = arith.constant 0 : i32
    %215 = vector.broadcast %c0_i32_88 : i32 to vector<1x128xi32>
    %216 = arith.addi %1, %215 : vector<1x128xi32>
    %c0_i32_89 = arith.constant 0 : i32
    %217 = vector.broadcast %c0_i32_89 : i32 to vector<1x128xi32>
    %218 = arith.cmpi sge, %216, %217 : vector<1x128xi32>
    %219 = arith.andi %214, %218 : vector<1x128xi1>
    %c0_i32_90 = arith.constant 0 : i32
    %220 = vector.broadcast %c0_i32_90 : i32 to vector<1x128xi32>
    %221 = arith.addi %1, %220 : vector<1x128xi32>
    %c8_i32_91 = arith.constant 8 : i32
    %222 = vector.broadcast %c8_i32_91 : i32 to vector<1x128xi32>
    %223 = arith.cmpi slt, %221, %222 : vector<1x128xi32>
    %224 = arith.andi %219, %223 : vector<1x128xi1>
    %225 = arith.extui %224 : vector<1x128xi1> to vector<1x128xi32>
    %226 = arith.sitofp %225 : vector<1x128xi32> to vector<1x128xf32>
    %227 = vector.broadcast %226 : vector<1x128xf32> to vector<8x128xf32>
    %228 = arith.mulf %205, %227 : vector<8x128xf32>
    %c56 = arith.constant 56 : index
    %c0_92 = arith.constant 0 : index
    %229 = vector.load %arg13[%c56, %c0_92] : memref<72x128xf32, #tpu.memory_space<vmem>>, vector<8x128xf32>
    tpu.vector_store %arg13[%c56, %c0_92], %228 {strides = array<i32>} : memref<72x128xf32, #tpu.memory_space<vmem>>, vector<8x128xf32>,
    %c119_i32 = arith.constant 119 : i32
    %230 = tpu.dynamic_rotate %28 by %c119_i32 dim 1 : vector<8x128xf32>, i32 -> vector<8x128xf32>
    %c1_i32_93 = arith.constant 1 : i32
    %231 = vector.broadcast %c1_i32_93 : i32 to vector<1x128xi32>
    %232 = arith.addi %0, %231 : vector<1x128xi32>
    %c0_i32_94 = arith.constant 0 : i32
    %233 = vector.broadcast %c0_i32_94 : i32 to vector<1x128xi32>
    %234 = arith.cmpi sge, %232, %233 : vector<1x128xi32>
    %c1_i32_95 = arith.constant 1 : i32
    %235 = vector.broadcast %c1_i32_95 : i32 to vector<1x128xi32>
    %236 = arith.addi %0, %235 : vector<1x128xi32>
    %c8_i32_96 = arith.constant 8 : i32
    %237 = vector.broadcast %c8_i32_96 : i32 to vector<1x128xi32>
    %238 = arith.cmpi slt, %236, %237 : vector<1x128xi32>
    %239 = arith.andi %234, %238 : vector<1x128xi1>
    %c1_i32_97 = arith.constant 1 : i32
    %240 = vector.broadcast %c1_i32_97 : i32 to vector<1x128xi32>
    %241 = arith.addi %1, %240 : vector<1x128xi32>
    %c0_i32_98 = arith.constant 0 : i32
    %242 = vector.broadcast %c0_i32_98 : i32 to vector<1x128xi32>
    %243 = arith.cmpi sge, %241, %242 : vector<1x128xi32>
    %244 = arith.andi %239, %243 : vector<1x128xi1>
    %c1_i32_99 = arith.constant 1 : i32
    %245 = vector.broadcast %c1_i32_99 : i32 to vector<1x128xi32>
    %246 = arith.addi %1, %245 : vector<1x128xi32>
    %c8_i32_100 = arith.constant 8 : i32
    %247 = vector.broadcast %c8_i32_100 : i32 to vector<1x128xi32>
    %248 = arith.cmpi slt, %246, %247 : vector<1x128xi32>
    %249 = arith.andi %244, %248 : vector<1x128xi1>
    %250 = arith.extui %249 : vector<1x128xi1> to vector<1x128xi32>
    %251 = arith.sitofp %250 : vector<1x128xi32> to vector<1x128xf32>
    %252 = vector.broadcast %251 : vector<1x128xf32> to vector<8x128xf32>
    %253 = arith.mulf %230, %252 : vector<8x128xf32>
    %c64 = arith.constant 64 : index
    %c0_101 = arith.constant 0 : index
    %254 = vector.load %arg13[%c64, %c0_101] : memref<72x128xf32, #tpu.memory_space<vmem>>, vector<8x128xf32>
    tpu.vector_store %arg13[%c64, %c0_101], %253 {strides = array<i32>} : memref<72x128xf32, #tpu.memory_space<vmem>>, vector<8x128xf32>,
    %c0_102 = arith.constant 0 : index
    %c0_103 = arith.constant 0 : index
    %255 = vector.load %arg5[%c0_102, %c0_103] : memref<8x72xbf16, #tpu.memory_space<vmem>>, vector<8x72xbf16>
    %c0_104 = arith.constant 0 : index
    %c0_105 = arith.constant 0 : index
    %256 = vector.load %arg13[%c0_104, %c0_105] : memref<72x128xf32, #tpu.memory_space<vmem>>, vector<72x128xf32>
    %257 = arith.truncf %256 : vector<72x128xf32> to vector<72x128xbf16>
    %cst_106 = arith.constant dense<0.000000e+00> : vector<8x128xf32>
    %258 = tpu.matmul %255, %257, %cst_106 {dimension_numbers = #tpu.dot_dimension_numbers<[1], [0], [0], [1], [0, 0, 1, 1], [], []>} : vector<8x72xbf16>, vector<72x128xbf16>, vector<8x128xf32> -> vector<8x128xf32>
    %cst_107 = arith.constant dense<0.000000e+00> : vector<8xf32>
    %259 = vector.multi_reduction <add>, %258, %cst_107 [1] : vector<8x128xf32> to vector<8xf32>
    %260 = vector.shape_cast %259 : vector<8xf32> to vector<8x1xf32>
    %cst_108 = arith.constant 7.812500e-03 : f32
    %261 = vector.broadcast %cst_108 : f32 to vector<8x1xf32>
    %262 = arith.mulf %260, %261 : vector<8x1xf32>
    %263 = vector.broadcast %262 : vector<8x1xf32> to vector<8x128xf32>
    %264 = arith.subf %258, %263 : vector<8x128xf32>
    %265 = arith.mulf %264, %264 : vector<8x128xf32>
    %cst_109 = arith.constant dense<0.000000e+00> : vector<8xf32>
    %266 = vector.multi_reduction <add>, %265, %cst_109 [1] : vector<8x128xf32> to vector<8xf32>
    %267 = vector.shape_cast %266 : vector<8xf32> to vector<8x1xf32>
    %cst_110 = arith.constant 7.812500e-03 : f32
    %268 = vector.broadcast %cst_110 : f32 to vector<8x1xf32>
    %269 = arith.mulf %267, %268 : vector<8x1xf32>
    %cst_111 = arith.constant 9.99999974E-6 : f32
    %270 = vector.broadcast %cst_111 : f32 to vector<8x1xf32>
    %271 = arith.addf %269, %270 : vector<8x1xf32>
    %272 = math.rsqrt %271 : vector<8x1xf32>
    %273 = vector.broadcast %272 : vector<8x1xf32> to vector<8x128xf32>
    %274 = arith.mulf %264, %273 : vector<8x128xf32>
    %c0_112 = arith.constant 0 : index
    %c0_113 = arith.constant 0 : index
    %275 = vector.load %arg10[%c0_112, %c0_113] : memref<8x1xf32, #tpu.memory_space<vmem>>, vector<8x1xf32>
    %276 = vector.broadcast %275 : vector<8x1xf32> to vector<8x128xf32>
    %277 = arith.mulf %274, %276 : vector<8x128xf32>
    %c0_114 = arith.constant 0 : index
    %c0_115 = arith.constant 0 : index
    %278 = vector.load %arg11[%c0_114, %c0_115] : memref<8x1xf32, #tpu.memory_space<vmem>>, vector<8x1xf32>
    %279 = vector.broadcast %278 : vector<8x1xf32> to vector<8x128xf32>
    %280 = arith.addf %277, %279 : vector<8x128xf32>
    %281 = arith.addf %280, %53 : vector<8x128xf32>
    %cst_116 = arith.constant 0.000000e+00 : f32
    %282 = vector.broadcast %cst_116 : f32 to vector<8x128xf32>
    %283 = arith.maximumf %281, %282 : vector<8x128xf32>
    %c0_117 = arith.constant 0 : index
    %c0_118 = arith.constant 0 : index
    %284 = vector.load %arg12[%c0_117, %c0_118] : memref<8x128xf32, #tpu.memory_space<vmem>>, vector<8x128xf32>
    tpu.vector_store %arg12[%c0_117, %c0_118], %283 {strides = array<i32>} : memref<8x128xf32, #tpu.memory_space<vmem>>, vector<8x128xf32>,
    return
  }
}

</mosaic_0001>

<bundles_post_ra>
// kernel: basic_block_forward.1
= control target key start
LH: loop header
LB: loop body
LE: loop exit
PB: predicated region body
PF: predicated region fallthrough
CT: control target
= control target key end

     0   :  { %v502_v0 = vmov 0.0   ;;  %vm503_vm0 = vmmov 0   ;;  %vm69_vm1 = vcmask 1041408   ;;  %vm65_vm2 = vcmask 293888   ;;  %s509_s17 = smov 1   ;;  %s510_s18 = smov 127   ;;  %s700_s0 = inlined_call_operand.vmem [shape: bf16[36,128], index: 0, kind: input, shape index: {}]   ;;  %s701_s3 = inlined_call_operand.vmem [shape: bf16[8,36], index: 3, kind: input, shape index: {}]   ;;  %s702_s1 = inlined_call_operand.vmem [shape: bf16[4,128], index: 1, kind: input, shape index: {}]   ;;  %s703_s4 = inlined_call_operand.vmem [shape: bf16[8,4], index: 4, kind: input, shape index: {}]   ;;  %s704_s6 = inlined_call_operand.vmem [shape: f32[8,1], index: 6, kind: input, shape index: {}]   ;;  %s705_s7 = inlined_call_operand.vmem [shape: f32[8,1], index: 7, kind: input, shape index: {}]   ;;  %s706_s10 = inlined_call_operand.vmem [shape: f32[8,1], index: 10, kind: input, shape index: {}]   ;;  %s707_s9 = inlined_call_operand.vmem [shape: f32[8,1], index: 9, kind: input, shape index: {}]   ;;  %s708_s2 = inlined_call_operand.vmem [shape: s32[2,128], index: 2, kind: input, shape index: {}]   ;;  %s709_s5 = inlined_call_operand.vmem [shape: bf16[8,72], index: 5, kind: input, shape index: {}]   ;;  %s710_s8 = inlined_call_operand.vmem [shape: f32[8,1], index: 8, kind: input, shape index: {}]   ;;  %s711_s11 = inlined_call_operand.vmem [shape: f32[8,1], index: 11, kind: input, shape index: {}]   ;;  %s712_s12 = inlined_call_operand.vmem [shape: f32[8,128], index: 12, kind: output, shape index: {}]  }
   0x1   :  { %450 = vmatprep.subr.bf16.mxu0 %v502_v0  ;;  %v493_v1 = vld [vmem:[%s700_s0] sm:$0xff]   ;;  %456 = vmatprep.mubr.msk.bf16.mxu0 %vm503_vm0, %v502_v0  ;;  %v494_v2 = vld [vmem:[%s700_s0 + $0x8] sm:$0xff]   ;;  %v495_v3 = vld [vmem:[%s700_s0 + $0x10] ss:$0 sps:$4 sm:$0x33]   ;;  %v504_v11 = vmov 0   ;;  %v226_v41 = vlaneseq }
   0x2   :  { %466 = vmatprep.subr.bf16.mxu1 %v502_v0  ;;  %476 = vmatprep.mubr.msk.bf16.mxu1 %vm503_vm0, %v502_v0  ;;  %v71_v4 = vsel %vm69_vm1, %v495_v3, 0  ;;  %v49_v5 = vld [vmem:[%s701_s3] sm:$0xf]  ;;  %vm141_vm3 = vcmask 31744   ;;  %s511_s19 = smov 121   ;;  %s512_s20 = smov 120  }
   0x3   :  { %451 = vmatpush3.bf16.msra.mxu0 %v493_v1  ;;  %v140_v10 = vld [vmem:[%s702_s1] sm:$0x3]  ;;  %491 = vset.pattern.permute.xlu1 %v504_v11  ;;  %s505_s1 = smov 8   ;;  %v227_v43 = vshrl.u32 %v226_v41, 7 }
   0x4   :  { %452 = vmatprep.subr.bf16.mxu0 %v502_v0  ;;  %v124_v12 = vld [vmem:[%s704_s6] sm:$0xff]  ;;  %492 = vset.pattern.permute.xlu0 %v504_v11  ;;  %v146_v13 = vsel %vm69_vm1, %v140_v10, 0  ;;  %s507_s6 = smov 7  }
   0x5   :  { %127 = vperm.xlu1 %491, %v124_v12   ;;  %v139_v14 = vld [vmem:[%s703_s4] sm:$0xf]  ;;  %s506_s4 = smov 9   ;;  %v228_v44 = vsub.s32 0, %v227_v43 }
   0x6   :  { %v131_v15 = vld [vmem:[%s705_s7] sm:$0xff]  ;;  %s508_s7 = smov 119  }
   0x7   :  { %453 = vmatpush3.bf16.msra.mxu0 %v494_v2  ;;  %v403_v34 = vld [vmem:[%s706_s10] sm:$0xff] }
   0x8   :  { %454 = vmatprep.subr.bf16.mxu0 %v502_v0  ;;  %v206_v35 = vld [vmem:[%s707_s9] sm:$0xff] }
   0x9   :  { %134 = vperm.xlu1 %491, %v131_v15   ;;  %v42_v36 = vld [vmem:[%s708_s2] sm:$0x1]  ;;  %v43_v38 = vld [vmem:[%s708_s2 + $0x1] sm:$0x1] }
   0xa   :  { %v215_v37 = vadd.s32 4294967295, %v42_v36  ;;  %v219_v39 = vadd.s32 4294967295, %v43_v38  ;;  %vm234_vm7 = vcmp.ge.s32.totalorder %v43_v38, 0  ;;  %vm236_vm10 = vcmp.lt.s32.totalorder %v43_v38, 8 }
   0xb   :  { %455 = vmatpush3.bf16.msra.mxu0 %v71_v4  ;;  %v248_v42 = vadd.s32 1, %v43_v38  ;;  %vm263_vm14 = vcmp.ge.s32.totalorder %v42_v36, 0  ;;  %vm264_vm15 = vcmp.lt.s32.totalorder %v42_v36, 8  ;;  %v291_v48 = vadd.s32 1, %v42_v36 }
   0xc   :  { %460 = vmatprep.subr.bf16.mxu0 %v502_v0  ;;  %vm216_vm4 = vcmp.ge.s32.totalorder %v215_v37, 0  ;;  %vm217_vm5 = vcmp.lt.s32.totalorder %v215_v37, 8  ;;  %vm220_vm8 = vcmp.ge.s32.totalorder %v219_v39, 0  ;;  %vm222_vm12 = vcmp.lt.s32.totalorder %v219_v39, 8 }
   0xd   :  { %vm640_vm6 = vmand %vm216_vm4, %vm217_vm5  ;;  %vm249_vm1 = vcmp.ge.s32.totalorder %v248_v42, 0  ;;  %vm251_vm4 = vcmp.lt.s32.totalorder %v248_v42, 8 }
   0xe   :  { %457 = vmatmul.mubr.msk.bf16.vlgmr.msra.gmra.mrb[0].mxu0 %vm65_vm2, %v49_v5  ;;  %vm235_vm9 = vmand %vm640_vm6, %vm234_vm7 }
   0xf   :  { %462 = vmatprep.mubr.msk.bf16.mxu0 %vm503_vm0, %v502_v0  ;;  %461 = vmatpush3.bf16.msra.mxu0 %v146_v13  ;;  %vm221_vm11 = vmand %vm640_vm6, %vm220_vm8 }
  0x10   :  { %vm237_vm13 = vmand %vm235_vm9, %vm236_vm10 }
  0x11   :  { %vm223_vm0 = vmand %vm221_vm11, %vm222_vm12  ;;  %v430_v46 = vsel %vm237_vm13, 1.0, %v502_v0  ;;  %vm292_vm11 = vcmp.ge.s32.totalorder %v291_v48, 0 }
  0x12   :  { %vm652_vm2 = vmand %vm263_vm14, %vm264_vm15  ;;  %v429_v47 = vsel %vm223_vm0, 1.0, %v502_v0  ;;  %v243_v49 = vrot.slane %v430_v46, %v228_v44  ;;  %vm293_vm14 = vcmp.lt.s32.totalorder %v291_v48, 8 }
  0x13   :  { %vm266_vm5 = vmand %vm652_vm2, %vm220_vm8  ;;  %v229_v50 = vrot.slane %v429_v47, %v228_v44 }
  0x14   :  { %vm267_vm13 = vmand %vm266_vm5, %vm222_vm12 }
  0x15   :  { %vm294_vm15 = vmand %vm292_vm11, %vm293_vm14  ;;  %v432_v56 = vsel %vm267_vm13, 1.0, %v502_v0 }
  0x16   :  { %463 = vmatmul.mubr.msk.bf16.vlgmr.msra.gmra.mrb[4].mxu0 %vm141_vm3, %v139_v14  ;;  %vm250_vm3 = vmand %vm640_vm6, %vm249_vm1  ;;  %v273_v60 = vrot.slane %v432_v56, %v228_v44 }
  0x17   :  { %vm252_vm9 = vmand %vm250_vm3, %vm251_vm4 }
  0x18   :  { %vm279_vm6 = vmand %vm652_vm2, %vm249_vm1  ;;  %v431_v55 = vsel %vm252_vm9, 1.0, %v502_v0 }
  0x19   :  { %vm280_vm0 = vmand %vm279_vm6, %vm251_vm4  ;;  %v258_v59 = vrot.slane %v431_v55, %v228_v44 }
  0x1a   :  { %vm319_vm3 = vmand %vm294_vm15, %vm249_vm1  ;;  %v433_v61 = vsel %vm280_vm0, 1.0, %v502_v0 }
  0x1b   :  { %vm295_vm2 = vmand %vm294_vm15, %vm220_vm8  ;;  %v286_v2 = vrot.slane %v433_v61, %v228_v44  ;;  %vm344_vm8 = vcmask 588800  }
  0x1c   :  { %vm307_vm5 = vmand %vm294_vm15, %vm234_vm7  ;;  %vm348_vm7 = vcmask 1043456  }
  0x1d   :  { %vm320_vm9 = vmand %vm319_vm3, %vm251_vm4 }
  0x1e   :  { %vm296_vm11 = vmand %vm295_vm2, %vm222_vm12  ;;  %v436_v5 = vsel %vm320_vm9, 1.0, %v502_v0 }
  0x1f   :  { %vm308_vm14 = vmand %vm307_vm5, %vm236_vm10  ;;  %v326_v10 = vrot.slane %v436_v5, %v228_v44 }
  0x84   :  { %v128_v27 = vpop.permute.xlu1 %127 }
  0x88   :  { %v135_v31 = vpop.permute.xlu1 %134 }
  0xe1   :  { %v107_v6 = vpop.f32.mrb[0].mxu0 }
  0xe2   :  { %113 = vadd.xlane.f32.xlu0 %v107_v6  ;;  %v458_v7 = vpop.f32.mrb[1].mxu0 }
  0xe3   :  { %v110_v8 = vpop.f32.mrb[2].mxu0  ;;  %v434_v7 = vsel %vm296_vm11, 1.0, %v502_v0 }
  0xe4   :  { %v459_v9 = vpop.f32.mrb[3].mxu0  ;;  %v435_v8 = vsel %vm308_vm14, 1.0, %v502_v0  ;;  %v302_v13 = vrot.slane %v434_v7, %v228_v44 }
  0xe5   :  { %v314_v14 = vrot.slane %v435_v8, %v228_v44 }
  0xe9   :  { %v615_v20 = vpop.f32.mrb[4].mxu0 }
  0xea   :  { %v464_v21 = vpop.f32.mrb[5].mxu0 }
  0xeb   :  { %v185_v22 = vpop.f32.mrb[6].mxu0 }
  0xec   :  { %v465_v23 = vpop.f32.mrb[7].mxu0 }
  0xed   :  { %v329_v23 = vld [vmem:[%s709_s5] sm:$0xf] }
 0x16f   :  { %v114_v16 = vpop.xlane.xlu0 %113 }
 0x170   :  { %v115_v17 = vmul.f32 0.0078125, %v114_v16 }
 0x172   :  { %v116_v18 = vsub.f32 %v107_v6, %v115_v17 }
 0x174   :  { %v117_v19 = vmul.f32 %v116_v18, %v116_v18 }
 0x176   :  { %118 = vadd.xlane.f32.xlu0 %v117_v19 }
 0x203   :  { %v119_v24 = vpop.xlane.xlu0 %118 }
 0x204   :  { %v120_v25 = vmul.f32 0.0078125, %v119_v24 }
 0x206   :  { %v121_v26 = vadd.f32 1e-05, %v120_v25 }
 0x208   :  { %496 = vrsqrt.f32 %v121_v26 }
 0x212   :  { %v497_v28 = vpop.eup %496 }
 0x213   :  { %v123_v29 = vmul.f32 %v497_v28, %v116_v18 }
 0x215   :  { %v130_v30 = vmul.f32 %v128_v27, %v123_v29 }
 0x217   :  { %v137_v32 = vadd.f32 %v135_v31, %v130_v30 }
 0x219   :  { %v617_v33 = vmax.f32 %v137_v32, 0.0 }
 0x21b   :  { %232 = vrot.lane.b32.xlu1 %v617_v33, %s505_s1  ;;  %213 = vrot.lane.b32.xlu0 %v617_v33, %s506_s4 }
 0x21f   :  { %246 = vrot.lane.b32.xlu1 %v617_v33, %s507_s6  ;;  %317 = vrot.lane.b32.xlu0 %v617_v33, %s508_s7 }
 0x223   :  { %261 = vrot.lane.b32.xlu1 %v617_v33, %s509_s17 }
 0x227   :  { %277 = vrot.lane.b32.xlu1 %v617_v33, %s510_s18 }
 0x22b   :  { %289 = vrot.lane.b32.xlu1 %v617_v33, %s511_s19 }
 0x22f   :  { %305 = vrot.lane.b32.xlu1 %v617_v33, %s512_s20 }
 0x253   :  { %188 = vadd.xlane.f32.xlu1 %v615_v20 }
 0x264   :  { %406 = vperm.xlu1 %491, %v403_v34  }
 0x268   :  { %209 = vperm.xlu1 %491, %v206_v35  }
 0x28d   :  { %v233_v51 = vpop.permute.xlu1 %232  ;;  %v214_v52 = vpop.permute.xlu0 %213 }
 0x28e   :  { %v244_v53 = vmul.f32 %v243_v49, %v233_v51  ;;  %v230_v54 = vmul.f32 %v229_v50, %v214_v52 }
 0x290   :  { %v339_v57 = vpack.c.bf16 %v244_v53, %v230_v54 }
 0x291   :  { %v247_v58 = vpop.permute.xlu1 %246  ;;  %v318_v12 = vpop.permute.xlu0 %317 }
 0x292   :  { %467 = vmatpush3.bf16.msra.mxu1 %v339_v57  ;;  %v259_v63 = vmul.f32 %v258_v59, %v247_v58  ;;  %v327_v15 = vmul.f32 %v326_v10, %v318_v12 }
 0x293   :  { %468 = vmatprep.subr.bf16.mxu1 %v502_v0 }
 0x294   :  { %v343_v21 = vpack.c.bf16 %v327_v15, %v327_v15 }
 0x295   :  { %v262_v62 = vpop.permute.xlu1 %261 }
 0x296   :  { %v274_v1 = vmul.f32 %v273_v60, %v262_v62  ;;  %v350_v22 = vsel %vm348_vm7, %v343_v21, 0 }
 0x298   :  { %v340_v3 = vpack.c.bf16 %v274_v1, %v259_v63 }
 0x299   :  { %v278_v4 = vpop.permute.xlu1 %277 }
 0x29a   :  { %v287_v6 = vmul.f32 %v286_v2, %v278_v4  ;;  %469 = vmatpush3.bf16.msra.mxu1 %v340_v3 }
 0x29b   :  { %470 = vmatprep.subr.bf16.mxu1 %v502_v0 }
 0x29c   :  { %v341_v9 = vpack.c.bf16 %v287_v6, %v617_v33 }
 0x29d   :  { %v290_v11 = vpop.permute.xlu1 %289 }
 0x29e   :  { %471 = vmatpush3.bf16.msra.mxu1 %v341_v9  ;;  %v303_v17 = vmul.f32 %v302_v13, %v290_v11 }
 0x29f   :  { %472 = vmatprep.subr.bf16.mxu1 %v502_v0 }
 0x2a1   :  { %v306_v16 = vpop.permute.xlu1 %305 }
 0x2a2   :  { %v315_v18 = vmul.f32 %v314_v14, %v306_v16 }
 0x2a4   :  { %v342_v19 = vpack.c.bf16 %v315_v18, %v303_v17 }
 0x2a6   :  { %473 = vmatpush3.bf16.msra.mxu1 %v342_v19 }
 0x2a7   :  { %474 = vmatprep.subr.bf16.mxu1 %v502_v0  ;;  %v199_v0 = vld [vmem:[%s710_s8] sm:$0xff] }
 0x2aa   :  { %475 = vmatpush3.bf16.msra.mxu1 %v350_v22 }
 0x2ad   :  { %477 = vmatmul.mubr.msk.bf16.vlgmr.msra.gmra.mrb[0].mxu1 %vm344_vm8, %v329_v23 }
 0x2e0   :  { %v189_v24 = vpop.xlane.xlu1 %188 }
 0x2e1   :  { %v190_v25 = vmul.f32 0.0078125, %v189_v24 }
 0x2e3   :  { %v191_v26 = vsub.f32 %v615_v20, %v190_v25  ;;  %v410_v20 = vld [vmem:[%s711_s11] sm:$0xff] }
 0x2e4   :  { %v407_v37 = vpop.permute.xlu1 %406 }
 0x2e5   :  { %v192_v29 = vmul.f32 %v191_v26, %v191_v26 }
 0x2e8   :  { %v210_v40 = vpop.permute.xlu1 %209 }
 0x380   :  { %v386_v27 = vpop.f32.mrb[0].mxu1 }
 0x381   :  { %392 = vadd.xlane.f32.xlu0 %v386_v27  ;;  %v478_v28 = vpop.f32.mrb[1].mxu1 }
 0x382   :  { %v389_v30 = vpop.f32.mrb[2].mxu1 }
 0x383   :  { %v479_v31 = vpop.f32.mrb[3].mxu1 }
 0x385   :  { %193 = vadd.xlane.f32.xlu0 %v192_v29 }
 0x39b   :  { %202 = vperm.xlu0 %492, %v199_v0  }
 0x40e   :  { %v393_v32 = vpop.xlane.xlu0 %392 }
 0x40f   :  { %v394_v33 = vmul.f32 0.0078125, %v393_v32 }
 0x411   :  { %v395_v34 = vsub.f32 %v386_v27, %v394_v33 }
 0x412   :  { %v194_v36 = vpop.xlane.xlu0 %193 }
 0x413   :  { %v396_v35 = vmul.f32 %v395_v34, %v395_v34  ;;  %v195_v38 = vmul.f32 0.0078125, %v194_v36 }
 0x415   :  { %397 = vadd.xlane.f32.xlu1 %v396_v35  ;;  %v196_v39 = vadd.f32 1e-05, %v195_v38 }
 0x417   :  { %498 = vrsqrt.f32 %v196_v39 }
 0x41a   :  { %v203_v46 = vpop.permute.xlu0 %202 }
 0x421   :  { %v499_v44 = vpop.eup %498 }
 0x422   :  { %v198_v45 = vmul.f32 %v499_v44, %v191_v26 }
 0x424   :  { %v205_v48 = vmul.f32 %v203_v46, %v198_v45 }
 0x426   :  { %413 = vperm.xlu1 %491, %v410_v20   ;;  %v212_v52 = vadd.f32 %v210_v40, %v205_v48 }
 0x4a2   :  { %v398_v41 = vpop.xlane.xlu1 %397 }
 0x4a3   :  { %v399_v42 = vmul.f32 0.0078125, %v398_v41 }
 0x4a5   :  { %v400_v43 = vadd.f32 1e-05, %v399_v42 }
 0x4a6   :  { %v414_v51 = vpop.permute.xlu1 %413 }
 0x4a7   :  { %500 = vrsqrt.f32 %v400_v43 }
 0x4b1   :  { %v501_v47 = vpop.eup %500 }
 0x4b2   :  { %v402_v49 = vmul.f32 %v501_v47, %v395_v34 }
 0x4b4   :  { %v409_v50 = vmul.f32 %v407_v37, %v402_v49 }
 0x4b6   :  { %v416_v53 = vadd.f32 %v414_v51, %v409_v50 }
 0x4b8   :  { %v417_v54 = vadd.f32 %v416_v53, %v212_v52 }
 0x4ba   :  { %v418_v55 = vmax.f32 %v417_v54, 0.0 }
 0x4bc   :  { %419 = vst [vmem:[%s712_s12] sm:$0xff] %v418_v55 }

</bundles_post_ra>
